<compile_context>
chip_gen: v5e
topology: v5e:2x2
jax: 0.10.0
libtpu: 0.0.40
codegen_flags: <defaults>
</compile_context>

<pallas_src>
import jax
import jax.numpy as jnp
from jax import lax
from jax.experimental import pallas as pl
from jax.experimental.pallas import tpu as pltpu


def _make_tv_kernel(tb, th, w, nc, h, n_i, n_j, ragged_nc, ragged_h):
    """Kernel over one (tb, th, w) block -> per-step (1,1,w)/(1,1,w-1) sums."""

    def kernel(x_ref, ph_ref, pw_ref):

        def compute(masked):
            # Cast to f32 on the VPU in-kernel (input DMA stays native dtype).
            x = x_ref[...].astype(jnp.float32)            # (tb, th, w)

            dh = jnp.abs(x[:, 1:, :] - x[:, :-1, :])      # (tb, th-1, w)
            dw = jnp.abs(x[:, :, 1:] - x[:, :, :-1])      # (tb, th, w-1)

            if masked:
                # Only traced for the (static) ragged case and only executed
                # on the edge grid steps (gated by pl.when below).
                i = pl.program_id(0)
                j = pl.program_id(1)
                valid_nc = nc - i * tb                    # > tb when not last i
                valid_h = h - j * th                      # > th when not last j

                nc_ih = lax.broadcasted_iota(jnp.int32, dh.shape, 0)
                h_ih = lax.broadcasted_iota(jnp.int32, dh.shape, 1)
                dh = jnp.where((nc_ih < valid_nc) & (h_ih < valid_h - 1),
                               dh, 0.0)

                nc_iw = lax.broadcasted_iota(jnp.int32, dw.shape, 0)
                h_iw = lax.broadcasted_iota(jnp.int32, dw.shape, 1)
                dw = jnp.where((nc_iw < valid_nc) & (h_iw < valid_h),
                               dw, 0.0)

            # Reduce over the NC-batch axis (plain VPU adds) and the H
            # (sublane) axis (XLU); keep the lane (W) axis for the store.
            sh = jnp.sum(jnp.sum(dh, axis=0), axis=0)     # (w,)
            sw = jnp.sum(jnp.sum(dw, axis=0), axis=0)     # (w-1,)
            ph_ref[...] = sh.reshape(1, 1, w)
            pw_ref[...] = sw.reshape(1, 1, w - 1)

        if not (ragged_nc or ragged_h):
            compute(False)
        else:
            conds = []
            if ragged_nc:
                conds.append(pl.program_id(0) == n_i - 1)
            if ragged_h:
                conds.append(pl.program_id(1) == n_j - 1)
            is_edge = conds[0]
            for c in conds[1:]:
                is_edge = jnp.logical_or(is_edge, c)

            @pl.when(is_edge)
            def _():
                compute(True)

            @pl.when(jnp.logical_not(is_edge))
            def _():
                compute(False)

    return kernel


def tv_loss(x: jax.Array) -> jax.Array:
    """Total variation loss matching PyTorch TVLoss.forward.

    Args:
      x: NCHW array, shape (N, C, H, W), any float dtype.
    Returns:
      scalar float32 loss.
    """
    n, c, h, w = x.shape
    nc = n * c
    if nc == 0 or h < 2 or w < 2:
        # Degenerate cases: preserve PyTorch's empty-mean (NaN) semantics.
        return tv_loss_ref(x)

    x3 = x.reshape(nc, h, w)  # contiguous reshape, no data movement
    itemsize = x.dtype.itemsize

    # ---- per-generation VMEM budgeting -------------------------------------
    try:
        vmem_cap = int(pltpu.get_tpu_info().vmem_capacity_bytes)
    except Exception:
        vmem_cap = 64 * 1024 * 1024
    # 128 MiB VMEM (v5e/v6e) -> 64 MiB limit; 64 MiB VMEM (v7x) -> 48 MiB.
    vmem_limit = min(64 * 1024 * 1024, (vmem_cap * 3) // 4)

    pad_h = -(-h // 8) * 8
    pad_w = -(-w // 128) * 128
    # Live footprint per padded block element:
    #   2x double-buffered native-dtype input + f32 {x, dh, dw} (+ slack).
    bytes_per_elem = 2 * itemsize + 16
    max_block_elems = max(1, int(vmem_limit * 0.65) // bytes_per_elem)

    # ---- block sizing -------------------------------------------------------
    if pad_h * pad_w <= max_block_elems:
        # Whole slabs fit: batch TB slabs per step.
        tb = max(1, min(nc, max_block_elems // (pad_h * pad_w)))
        # Keep >= 4 NC blocks when possible (v7x megacore + DMA pipelining).
        tb = min(tb, max(1, -(-nc // 4)))
        th = h
        n_i_tmp = -(-nc // tb)
        if n_i_tmp < 4 and h >= 16:
            # Too few NC blocks: split H instead (no halo; seam fixed below).
            want_j = -(-4 // n_i_tmp)
            th = min(h, max(8, ((-(-h // want_j)) + 7) // 8 * 8))
    else:
        # A single slab does not fit: tile H (seam diffs handled in epilogue).
        tb = 1
        th = min(h, max(8, ((max_block_elems // pad_w) // 8) * 8))

    n_i = -(-nc // tb)
    n_j = -(-h // th)
    ragged_nc = (nc % tb) != 0
    ragged_h = (h % th) != 0

    # Safety: if even the minimal block overflows the budget, fall back.
    live_bytes = tb * (-(-th // 8) * 8) * pad_w * bytes_per_elem
    if live_bytes > vmem_limit:
        # TODO(synk): add W-axis tiling for extremely wide images.
        return tv_loss_ref(x)

    n_steps = n_i * n_j
    in_bytes = nc * h * w * itemsize
    out_bytes = n_steps * (w + (w - 1)) * 4

    partial_h, partial_w = pl.pallas_call(
        _make_tv_kernel(tb, th, w, nc, h, n_i, n_j, ragged_nc, ragged_h),
        out_shape=(
            jax.ShapeDtypeStruct((n_steps, 1, w), jnp.float32),
            jax.ShapeDtypeStruct((n_steps, 1, w - 1), jnp.float32),
        ),
        grid_spec=pltpu.PrefetchScalarGridSpec(
            num_scalar_prefetch=0,
            grid=(n_i, n_j),
            in_specs=[
                # Last two block dims: th is h or a multiple of 8; w is the
                # full array dim -> (8,128) rule satisfied.
                pl.BlockSpec((tb, th, w), lambda i, j: (i, j, 0)),
            ],
            out_specs=(
                pl.BlockSpec((1, 1, w), lambda i, j: (i * n_j + j, 0, 0)),
                pl.BlockSpec((1, 1, w - 1), lambda i, j: (i * n_j + j, 0, 0)),
            ),
        ),
        compiler_params=pltpu.CompilerParams(
            # Every grid step writes its own output block -> fully parallel,
            # megacore-shardable on v7x.
            dimension_semantics=("parallel", "parallel"),
            vmem_limit_bytes=vmem_limit,
        ),
        cost_estimate=pl.CostEstimate(
            flops=6 * nc * h * w,
            transcendentals=0,
            bytes_accessed=in_bytes + out_bytes,
        ),
    )(x3)

    # ---- tiny epilogue (plain JAX) ------------------------------------------
    sum_h = jnp.sum(partial_h)
    sum_w = jnp.sum(partial_w)

    if n_j > 1:
        # Cross-H-block seam diffs: rows (j*th-1, j*th) for j = 1..n_j-1.
        lo = x3[:, th - 1:(n_j - 1) * th:th, :].astype(jnp.float32)
        hi = x3[:, th:(n_j - 1) * th + 1:th, :].astype(jnp.float32)
        sum_h = sum_h + jnp.sum(jnp.abs(hi - lo))

    count_h = jnp.float32(nc * (h - 1) * w)
    count_w = jnp.float32(nc * h * (w - 1))
    return sum_h / count_h + sum_w / count_w


def tv_loss_ref(x: jax.Array) -> jax.Array:
    """Pure-JAX reference, mirrors the PyTorch code exactly."""
    x = x.astype(jnp.float32)
    return (jnp.mean(jnp.abs(x[:, :, :-1, :] - x[:, :, 1:, :])) +
            jnp.mean(jnp.abs(x[:, :, :, :-1] - x[:, :, :, 1:])))


if __name__ == "__main__":
    key = jax.random.PRNGKey(0)
    x = jax.random.normal(key, (2, 4, 16, 16), dtype=jnp.float32)

    out = jax.block_until_ready(tv_loss(x))
    ref = jax.block_until_ready(tv_loss_ref(x))

    assert out.shape == (), f"expected scalar, got {out.shape}"
    assert jnp.allclose(out, ref, rtol=1e-5, atol=1e-6), (out, ref)
    print("KERNEL_OK")
</pallas_src>

<mosaic_0001>
module attributes {stable_mosaic.version = 11 : i64} {
  func.func @kernel(%arg0: i32, %arg1: i32, %arg2: memref<2x16x16xf32, #tpu.memory_space<vmem>>, %arg3: memref<1x1x16xf32, #tpu.memory_space<vmem>>, %arg4: memref<1x1x15xf32, #tpu.memory_space<vmem>>) attributes {dimension_semantics = [#tpu.dimension_semantics<parallel>, #tpu.dimension_semantics<parallel>], iteration_bounds = array<i64: 4, 1>, scalar_prefetch = 0 : i64, scratch_operands = 0 : i64, tpu.core_type = #tpu.core_type<tc>, window_params = [{transform_indices = @transform_0, window_bounds = array<i64: 2, 16, 16>}, {transform_indices = @transform_1, window_bounds = array<i64: 1, 1, 16>}, {transform_indices = @transform_2, window_bounds = array<i64: 1, 1, 15>}]} {
    %c0 = arith.constant 0 : index
    %c0_0 = arith.constant 0 : index
    %c0_1 = arith.constant 0 : index
    %0 = vector.load %arg2[%c0, %c0_0, %c0_1] : memref<2x16x16xf32, #tpu.memory_space<vmem>>, vector<2x16x16xf32>
    %1 = vector.extract_strided_slice %0 {offsets = [0, 1, 0], sizes = [2, 15, 16], strides = [1, 1, 1]} : vector<2x16x16xf32> to vector<2x15x16xf32>
    %2 = vector.extract_strided_slice %0 {offsets = [0, 0, 0], sizes = [2, 15, 16], strides = [1, 1, 1]} : vector<2x16x16xf32> to vector<2x15x16xf32>
    %3 = arith.subf %1, %2 : vector<2x15x16xf32>
    %4 = math.absf %3 : vector<2x15x16xf32>
    %5 = vector.extract_strided_slice %0 {offsets = [0, 0, 1], sizes = [2, 16, 15], strides = [1, 1, 1]} : vector<2x16x16xf32> to vector<2x16x15xf32>
    %6 = vector.extract_strided_slice %0 {offsets = [0, 0, 0], sizes = [2, 16, 15], strides = [1, 1, 1]} : vector<2x16x16xf32> to vector<2x16x15xf32>
    %7 = arith.subf %5, %6 : vector<2x16x15xf32>
    %8 = math.absf %7 : vector<2x16x15xf32>
    %cst = arith.constant dense<0.000000e+00> : vector<15x16xf32>
    %9 = vector.multi_reduction <add>, %4, %cst [0] : vector<2x15x16xf32> to vector<15x16xf32>
    %cst_2 = arith.constant dense<0.000000e+00> : vector<16xf32>
    %10 = vector.multi_reduction <add>, %9, %cst_2 [0] : vector<15x16xf32> to vector<16xf32>
    %cst_3 = arith.constant dense<0.000000e+00> : vector<16x15xf32>
    %11 = vector.multi_reduction <add>, %8, %cst_3 [0] : vector<2x16x15xf32> to vector<16x15xf32>
    %cst_4 = arith.constant dense<0.000000e+00> : vector<15xf32>
    %12 = vector.multi_reduction <add>, %11, %cst_4 [0] : vector<16x15xf32> to vector<15xf32>
    %13 = vector.shape_cast %10 : vector<16xf32> to vector<1x1x16xf32>
    %c0_5 = arith.constant 0 : index
    %c0_6 = arith.constant 0 : index
    %c0_7 = arith.constant 0 : index
    %14 = vector.load %arg3[%c0_5, %c0_6, %c0_7] : memref<1x1x16xf32, #tpu.memory_space<vmem>>, vector<1x1x16xf32>
    tpu.vector_store %arg3[%c0_5, %c0_6, %c0_7], %13 {strides = array<i32>} : memref<1x1x16xf32, #tpu.memory_space<vmem>>, vector<1x1x16xf32>,
    %15 = vector.shape_cast %12 : vector<15xf32> to vector<1x1x15xf32>
    %c0_8 = arith.constant 0 : index
    %c0_9 = arith.constant 0 : index
    %c0_10 = arith.constant 0 : index
    %16 = vector.load %arg4[%c0_8, %c0_9, %c0_10] : memref<1x1x15xf32, #tpu.memory_space<vmem>>, vector<1x1x15xf32>
    tpu.vector_store %arg4[%c0_8, %c0_9, %c0_10], %15 {strides = array<i32>} : memref<1x1x15xf32, #tpu.memory_space<vmem>>, vector<1x1x15xf32>,
    return
  }
  func.func @transform_0(%arg0: i32, %arg1: i32) -> (i32, i32, i32) {
    %c0_i32 = arith.constant 0 : i32
    %c0_i32_0 = arith.constant 0 : i32
    return %arg0, %arg1, %c0_i32 : i32, i32, i32
  }
  func.func @transform_1(%arg0: i32, %arg1: i32) -> (i32, i32, i32) {
    %c1_i32 = arith.constant 1 : i32
    %0 = arith.muli %arg0, %c1_i32 : i32
    %1 = arith.addi %0, %arg1 : i32
    %c0_i32 = arith.constant 0 : i32
    %c0_i32_0 = arith.constant 0 : i32
    %c0_i32_1 = arith.constant 0 : i32
    return %1, %c0_i32, %c0_i32_0 : i32, i32, i32
  }
  func.func @transform_2(%arg0: i32, %arg1: i32) -> (i32, i32, i32) {
    %c1_i32 = arith.constant 1 : i32
    %0 = arith.muli %arg0, %c1_i32 : i32
    %1 = arith.addi %0, %arg1 : i32
    %c0_i32 = arith.constant 0 : i32
    %c0_i32_0 = arith.constant 0 : i32
    %c0_i32_1 = arith.constant 0 : i32
    return %1, %c0_i32, %c0_i32_0 : i32, i32, i32
  }
}

</mosaic_0001>

<bundles_post_ra>
// kernel: tpu_custom_call.1
= control target key start
LH: loop header
LB: loop body
LE: loop exit
PB: predicated region body
PF: predicated region fallthrough
CT: control target
= control target key end

     0   :  { %8 = vsyncpa [#allocation3], 0  ;;  %s819_s0 = inlined_call_operand.hbm [shape: f32[8,16,16], index: 0, kind: input, shape index: {}]   ;;  %s820_s1 = inlined_call_operand.hbm [shape: f32[4,1,16], index: 1, kind: output, shape index: {0}]   ;;  %s821_s2 = inlined_call_operand.hbm [shape: f32[4,1,15], index: 2, kind: output, shape index: {1}]  }
   0x1   :  { %10 = vsyncpa [#allocation3 + $0x1], 0 }
   0x2   :  { %11 = vsyncpa [#allocation4], 0 }
   0x3   :  { %13 = vsyncpa [#allocation4 + $0x1], 0 }
   0x4   :  { %14 = vsyncpa [#allocation7], 0 }
   0x5   :  { %16 = vsyncpa [#allocation7 + $0x1], 0  ;;  %s684_s9 = smov 0   ;;  %s686_s10 = smov 0  }
   0x6   :  { %s688_s11 = smov 0   ;;  %s690_s12 = smov 0  }
   0x7   :  { %s692_s13 = smov 0   ;;  %s694_s14 = smov 0  }
   0x8 LB: > { %s434_s15 = sadd.s32 4294967295, %s663_s14   ;;  %s435_s16 = sadd.s32 4294967294, %s663_s14   ;;  %s663_s14 = sphi %s694_s14, %s22_s14   ;;  %s659_s13 = sphi %s692_s13, %s830_s13   ;;  %s655_s12 = sphi %s690_s12, %s829_s12   ;;  %s651_s11 = sphi %s688_s11, %s828_s11   ;;  %s647_s10 = sphi %s686_s10, %s827_s10   ;;  %s643_s9 = sphi %s684_s9, %s826_s9  }
   0x9   : > { %s34_s17 = sadd.s32 1, %s659_s13  ;;  %s43_s18 = sadd.s32 1, %s651_s11 }
   0xa   : > { %p36_p0 = scmp.ge.s32.totalorder %s34_s17, 4  ;;  %p50_p1 = scmp.ne.s32.totalorder %s651_s11, %s647_s10 }
   0xb   : > { %p51_p2 = scmp.eq.s32.totalorder %s663_s14, 0  ;;  %p56_p3 = scmp.ne.s32.totalorder %s647_s10, %s643_s9 }
   0xc   : > { %s832_s17 = smov (%p36_p0, %s34_s17), 0  ;;  %p57_p5 = scmp.eq.s32.totalorder %s434_s15, 0 }
   0xd   : > { %p725_p4 = por %p51_p2, %p50_p1  ;;  %s38_s20 = ssub.s32 %s659_s13, %s832_s17 }
   0xe   : > { %p82_p6 = scmp.eq.s32.totalorder %s434_s15, 3  ;;  %p41_p7 = scmp.eq.s32.totalorder %s38_s20, 0 }
   0xf   : > { %p731_p8 = por %p57_p5, %p56_p3  ;;  %p88_p10 = scmp.eq.s32.totalorder %s435_s16, 3 }
  0x10   : > { %p735_p9 = por %p82_p6, %p50_p1  ;;  %p465_p12 = scmp.lt.s32.totalorder %s663_s14, 4 }
  0x11   : > { %s740_s23 = scalar_select %p41_p7, %s651_s11, %s43_s18  }
  0x12   : > { %p742_p11 = por %p88_p10, %p56_p3  ;;  %s136_s25 = sand.u32 1, %s651_s11  }
  0x13   : > { %s438_s26 = sshll.u32 %s136_s25, 5  ;;  %s447_s27 = sshll.u32 %s659_s13, 5 }
  0x14   : > { %s148_s30 = scalar_lea.hbm %s819_s0, %s447_s27  ;;  %s140_s3 = scalar_lea.vmem [#allocation2], %s438_s26 }
  0x15   : > { %s151_s4 = sshll.u32 %s140_s3, 4  ;;  %s149_s5 = sshll.u32 %s148_s30, 4  ;;  %s152_s4 = int_to_ptr.vmem [resolvable:$true] %s151_s4  ;;  %s150_s5 = int_to_ptr.hbm [resolvable:$true] %s149_s5 }
  0x16   : > { %p455_p13 = pnand %p465_p12, %p725_p4  ;;  %p442_p0 = scmp.ge.s32.totalorder %s663_s14, 1 }
  0x17   : > { %s137_s6 = scalar_lea.sflag [#allocation3], %s136_s25  ;;  %s665_s7 = smov 128  }
  0x18   : > { %s666_s8 = smov 8   ;;  %p159_p1 = scmp.lt.s32.totalorder %s663_s14, 5 }
  0x19   : > { %457 = dma.hbm_to_vmem [thread:$0]  (!%p455_p13), %s150_s5, 512, %s152_s4, %s137_s6, %s665_s7, %s665_s7, %s666_s8  }
  0x1a   : > { %p160_p2 = pnand %p442_p0, %p159_p1 }
  0x1b   : > { %s757_s15 = sand.u32 (!%p160_p2), 1, %s647_s10  }
  0x1c   : > { %163 = sbr.rel (%p160_p2) target bundleno = 274 (0x112), region = 24  ;;  %s443_s16 = sshll.u32 (!%p160_p2), %s757_s15, 5 }
  0x1d   : > { %s166_s18 = scalar_lea.sflag (!%p160_p2), [#allocation3], %s757_s15  ;;  %s169_s20 = scalar_lea.vmem (!%p160_p2), [#allocation2], %s443_s16 }
  0x21   : > { %630 = dma.done.wait (%p731_p8), %s166_s18, 512  }
  0x22   : > { %632 = vsyncadd (%p731_p8), %s166_s18, 4294966784  ;;  %v200_v0 = vld [vmem:[%s169_s20 + $0x10] sm:$0xff]  ;;  %v198_v1 = vld [vmem:[%s169_s20] sm:$0xff]  ;;  %s667_s19 = smov 1   ;;  %vm271_vm0 = vcmask 130056   ;;  %s668_s21 = smov 127  }
  0x23   : > { %229 = vrot.lane.b32.xlu1 %v200_v0, %s667_s19  ;;  %225 = vrot.lane.b32.xlu0 %v198_v1, %s667_s19  ;;  %v201_v2 = vld [vmem:[%s169_s20 + $0x18] sm:$0xff]  ;;  %v199_v3 = vld [vmem:[%s169_s20 + $0x8] sm:$0xff]  ;;  %v210_v31 = vrot.slane %v200_v0, 7  ;;  %v207_v32 = vrot.slane %v198_v1, 7  ;;  %vm206_vm1 = vcmask 1040384   ;;  %vm245_vm2 = vcmask 130049   ;;  %s309_s27 = scalar_lea.hbm %s820_s1, %s655_s12 }
  0x24   : > { %v211_v33 = vrot.slane %v201_v2, 7  ;;  %v208_v34 = vrot.slane %v199_v3, 7  ;;  %vm249_vm3 = vcmask 130048   ;;  %vm255_vm4 = vcmask 1046528   ;;  %s187_s28 = scalar_lea.vmem [#allocation5], %s757_s15  ;;  %s313_s30 = sshll.u32 %s309_s27, 4  ;;  %s314_s30 = int_to_ptr.hbm [resolvable:$true] %s313_s30 }
  0x25   : > { %v219_v37 = vsub.f32 %v200_v0, %v210_v31  ;;  %v217_v38 = vsub.f32 %v198_v1, %v207_v32  ;;  %vm262_vm5 = vcmask 129024   ;;  %s311_s29 = sshll.u32 %s187_s28, 4  ;;  %vm287_vm6 = vcmask 122880   ;;  %s296_s3 = scalar_lea.sflag [#allocation4], %s757_s15  ;;  %s312_s29 = int_to_ptr.vmem [resolvable:$true] %s311_s29 }
  0x26   : > { %v212_v35 = vsel %vm206_vm1, %v210_v31, %v211_v33  ;;  %v209_v36 = vsel %vm206_vm1, %v207_v32, %v208_v34  ;;  %s563_s4 = sshra.s32 %s314_s30, 4  ;;  %s569_s8 = scalar_lea.hbm %s820_s1, 4  ;;  %s564_s4 = int_to_ptr.hbm [resolvable:$true] %s563_s4 }
  0x27   : > { %v220_v39 = vsub.f32 %v201_v2, %v212_v35  ;;  %v218_v40 = vsub.f32 %v199_v3, %v209_v36  ;;  %v223_v41 = vand.u32 2147483647, %v219_v37  ;;  %v221_v42 = vand.u32 2147483647, %v217_v38  ;;  %s565_s5 = scalar_lea.hbm %s564_s4, 1  ;;  %p570_p6 = scmp.lt.s32.totalorder %s564_s4, %s820_s1 }
  0x28   : > { %p566_p3 = scmp.ne.s32.totalorder %s564_s4, %s565_s5  ;;  %p571_p7 = scmp.lt.s32.totalorder %s569_s8, %s565_s5 }
  0x29   : > { %v224_v43 = vand.u32 2147483647, %v220_v39  ;;  %v222_v44 = vand.u32 2147483647, %v218_v40  ;;  %v247_v45 = vsel %vm245_vm2, %v223_v41, 0.0  ;;  %v246_v46 = vsel %vm245_vm2, %v221_v42, 0.0 }
  0x2a   : > { %v248_v49 = vadd.f32 %v247_v45, %v246_v46  ;;  %p567_p4 = pnand %p566_p3, %p735_p9  ;;  %p572_p8 = por %p571_p7, %p570_p6 }
  0x2b   : > { %231 = vrot.lane.b32.xlu1 %v201_v2, %s667_s19  ;;  %227 = vrot.lane.b32.xlu0 %v199_v3, %s667_s19  ;;  %v251_v47 = vsel %vm249_vm3, %v224_v43, 0.0  ;;  %v250_v48 = vsel %vm249_vm3, %v222_v44, 0.0 }
  0x2c   : > { %v252_v50 = vadd.f32 %v251_v47, %v250_v48  ;;  %v256_v51 = vrot.slane %v248_v49, 1  ;;  %p568_p5 = pneg %p567_p4 }
  0x2e   : > { %v257_v52 = vrot.slane %v252_v50, 1  ;;  %p573_p10 = pnand %p572_p8, %p568_p5 }
  0x30   : > { %v258_v53 = vsel %vm255_vm4, %v256_v51, %v257_v52  ;;  %v263_v55 = vsel %vm262_vm5, %v257_v52, 0.0 }
  0x31   : > { %v261_v54 = vsel %vm249_vm3, %v258_v53, 0.0 }
  0x32   : > { %v264_v56 = vadd.f32 %v263_v55, %v261_v54 }
  0x34   : > { %v265_v57 = vrot.slane %v264_v56, 4 }
  0x36   : > { %v266_v58 = vadd.f32 %v265_v57, %v264_v56 }
  0x38   : > { %v267_v59 = vrot.slane %v266_v58, 2 }
  0x3a   : > { %v268_v60 = vadd.f32 %v267_v59, %v266_v58 }
  0x3c   : > { %v269_v61 = vrot.slane %v268_v60, 1 }
  0x3e   : > { %v270_v62 = vadd.f32 %v269_v61, %v268_v60 }
  0x40   : > { %288 = vst.msk [vmem:[%s187_s28] sm:$0x1] %vm287_vm6, %v270_v62 }
  0x95   : > { %v230_v4 = vpop.permute.xlu1 %229  ;;  %v226_v5 = vpop.permute.xlu0 %225 }
  0x96   : > { %v239_v6 = vsub.f32 %v200_v0, %v230_v4  ;;  %v237_v7 = vsub.f32 %v198_v1, %v226_v5 }
  0x98   : > { %v243_v8 = vand.u32 2147483647, %v239_v6  ;;  %v241_v9 = vand.u32 2147483647, %v237_v7 }
  0x9a   : > { %v273_v12 = vsel %vm271_vm0, %v243_v8, 0.0  ;;  %v272_v13 = vsel %vm271_vm0, %v241_v9, 0.0 }
  0x9b   : > { %v274_v18 = vadd.f32 %v273_v12, %v272_v13 }
  0x9d   : > { %v232_v10 = vpop.permute.xlu1 %231  ;;  %v228_v11 = vpop.permute.xlu0 %227  ;;  %v278_v22 = vsel %vm271_vm0, %v274_v18, 0.0 }
  0x9e   : > { %v240_v14 = vsub.f32 %v201_v2, %v232_v10  ;;  %v238_v15 = vsub.f32 %v199_v3, %v228_v11 }
  0xa0   : > { %v244_v16 = vand.u32 2147483647, %v240_v14  ;;  %v242_v17 = vand.u32 2147483647, %v238_v15 }
  0xa2   : > { %v276_v19 = vsel %vm271_vm0, %v244_v16, 0.0  ;;  %v275_v20 = vsel %vm271_vm0, %v242_v17, 0.0 }
  0xa3   : > { %v277_v21 = vadd.f32 %v276_v19, %v275_v20 }
  0xa5   : > { %v279_v23 = vsel %vm271_vm0, %v277_v21, 0.0 }
  0xa6   : > { %v280_v24 = vadd.f32 %v279_v23, %v278_v22 }
  0xa8   : > { %v281_v25 = vrot.slane %v280_v24, 4 }
  0xaa   : > { %v282_v26 = vadd.f32 %v281_v25, %v280_v24 }
  0xac   : > { %v283_v27 = vrot.slane %v282_v26, 2 }
  0xae   : > { %v284_v28 = vadd.f32 %v283_v27, %v282_v26 }
  0xb0   : > { %v285_v29 = vrot.slane %v284_v28, 1 }
  0xb2   : > { %v286_v30 = vadd.f32 %v285_v29, %v284_v28 }
  0xb4   : > { %290 = vrot.lane.b32.xlu2 %v286_v30, %s668_s21 }
  0xb5   : > { %576 = shalt.err (!%p573_p10)
}
  0xb6   : > { %450 = dma.vmem_to_hbm [thread:$0]  (%p735_p9), %s312_s29, 16, %s314_s30, %s296_s3   ;;  %vm293_vm7 = vcmask 114688  }
  0xb7   : > { %s323_s21 = scalar_lea.hbm %s821_s2, %s655_s12  ;;  %s193_s25 = scalar_lea.vmem [#allocation6], %s757_s15 }
  0xb8   : > { %s325_s26 = sshll.u32 %s193_s25, 4  ;;  %s327_s27 = sshll.u32 %s323_s21, 4  ;;  %s326_s26 = int_to_ptr.vmem [resolvable:$true] %s325_s26  ;;  %s328_s27 = int_to_ptr.hbm [resolvable:$true] %s327_s27 }
  0xb9   : > { %s300_s28 = scalar_lea.sflag [#allocation7], %s757_s15  ;;  %s591_s4 = sshra.s32 %s328_s27, 4  ;;  %s592_s4 = int_to_ptr.hbm [resolvable:$true] %s591_s4 }
  0xba   : > { %s593_s5 = scalar_lea.hbm %s592_s4, 1  ;;  %s597_s12 = scalar_lea.hbm %s821_s2, 4 }
  0xbb   : > { %p594_p12 = scmp.ne.s32.totalorder %s592_s4, %s593_s5  ;;  %p598_p1 = scmp.lt.s32.totalorder %s592_s4, %s821_s2 }
  0xbc   : > { %p599_p2 = scmp.lt.s32.totalorder %s597_s12, %s593_s5 }
  0xbd   : > { %p595_p13 = pnand %p594_p12, %p735_p9 }
  0xbe   : > { %p600_p3 = por %p599_p2, %p598_p1 }
  0xbf   : > { %p596_p0 = pneg %p595_p13 }
  0xc1   : > { %p601_p4 = pnand %p600_p3, %p596_p0 }
 0x10e   : > { %v291_v63 = vpop.permute.xlu2 %290 }
 0x10f   : > { %294 = vst.msk [vmem:[%s193_s25] sm:$0x1] %vm293_vm7, %v291_v63 }
 0x110   : > { %604 = shalt.err (!%p601_p4)
}
 0x111   : > { %451 = dma.vmem_to_hbm [thread:$0]  (%p735_p9), %s326_s26, 16, %s328_s27, %s300_s28  }
 0x112 PF: > { %p466_p5 = scmp.ge.s32.totalorder %s663_s14, 2  ;;  %s339_s15 = sand.u32 1, %s643_s9  }
 0x113   : > { %s340_s7 = scalar_lea.sflag [#allocation4], %s339_s15 }
 0x114   : > { %p459_p6 = pnand %p466_p5, %p742_p11 }
 0x116   : > { %p460_p7 = pneg %p459_p6 }
 0x118   : > { %634 = dma.done.wait (%p460_p7), %s340_s7, 16  }
 0x119   : > { %636 = vsyncadd (%p460_p7), %s340_s7, 4294967280  ;;  %s349_s8 = scalar_lea.sflag [#allocation7], %s339_s15 }
 0x11a   : > { %638 = dma.done.wait (%p460_p7), %s349_s8, 16  }
 0x11b   : > { %640 = vsyncadd (%p460_p7), %s349_s8, 4294967280  ;;  %s22_s14 = sadd.s32 1, %s663_s14   ;;  %s826_s9 = smov %s647_s10 }
 0x11c   : > { %p19_p8 = scmp.ge.s32.totalorder %s22_s14, 6   ;;  %s827_s10 = smov %s651_s11 }
 0x11d   : > { %s828_s11 = smov %s740_s23  ;;  %s829_s12 = smov %s659_s13 }
 0x11e   : > { %s830_s13 = smov %s832_s17  ;;  %21 = sbr.rel (!%p19_p8) target bundleno = 8 (0x8), region = 86 }
 0x123   :  { %354 = vsyncpa [#allocation3], 1 }
 0x124   :  { %356 = vsyncpa [#allocation3 + $0x1], 1 }
 0x125   :  { %357 = vsyncpa [#allocation4], 1 }
 0x126   :  { %359 = vsyncpa [#allocation4 + $0x1], 1 }
 0x127   :  { %360 = vsyncpa [#allocation7], 1 }
 0x128   :  { %362 = vsyncpa [#allocation7 + $0x1], 1 }

</bundles_post_ra>
